<compile_context>
chip_gen: v6e
topology: v6e:2x2x1
jax: 0.10.0
libtpu: 0.0.40
codegen_flags: <defaults>
</compile_context>

<pallas_src>
import math

import jax
import jax.numpy as jnp
from jax import lax
from jax.experimental import pallas as pl
from jax.experimental.pallas import tpu as pltpu

HIDDEN = 50        # fc1 output features (torch: Linear(in_dim, 50))
HIDDEN_PAD = 64    # padded to a sublane-friendly width; pad columns are zero
LANE = 128


def _round_up(n, m):
    return ((n + m - 1) // m) * m


def _round_down(n, m):
    return (n // m) * m


def _cdiv(a, b):
    return (a + b - 1) // b


def _vmem_budget():
    """Generation-aware VMEM request (v5e/v6e: 128 MiB phys, v7x: 64 MiB/TC)."""
    cap = 64 << 20                      # conservative fallback = v7x per-TC
    try:
        cap = int(pltpu.get_tpu_info().vmem_capacity_bytes)
    except Exception:
        pass
    # Request ~3/4 of per-core capacity, never above 56 MiB so we always leave
    # pipelining headroom even on v7x's 64 MiB TensorCores.
    vmem_limit = max(32 << 20, min(cap * 3 // 4, 56 << 20))
    tile_budget = vmem_limit - (8 << 20)      # headroom for compiler temporaries
    return vmem_limit, tile_budget


def _choose_tiles(batch, in_dim, x_bytes, tile_budget):
    """Pick (batch tile, K tile): 2x x-tile + W1 buffers + f32 temps <= budget."""

    def max_tb(tk):
        w1_bytes = 2 * tk * HIDDEN_PAD * 4              # worst case double-buffered
        per_row = 2 * tk * x_bytes + 3 * HIDDEN_PAD * 4  # x dbl-buf + acc + h temp
        avail = tile_budget - w1_bytes - (1 << 20)
        if avail < per_row * LANE:
            return 0
        return _round_down(avail // per_row, LANE)

    tk = in_dim                                   # whole feature row per block
    if max_tb(tk) < LANE:                         # very large in_dim: tile K
        tk = LANE
        for cand in (8192, 4096, 2048, 1024, 512, 256):
            if cand < in_dim and max_tb(cand) >= 2 * LANE:
                tk = cand
                break
    tb = max(LANE, max_tb(tk))
    tb = min(tb, 16384, _round_up(batch, LANE))
    if batch >= 8 * LANE:
        # keep >= ~8 grid steps so the DMA pipeline / v7x megacore has work
        tb = min(tb, max(LANE, _round_up(_cdiv(batch, 8), LANE)))
    return tb, tk


def _make_kernel(in_dim, tk, nk, need_k_mask):
    def _project(h, w2, b2_scalar, o_ref):
        # 50 -> 1 projection on the (otherwise idle) MXU, emitting the
        # lane-dense [1, TB] slab directly (no sublane->lane relayout).
        y = lax.dot_general(w2, h, dimension_numbers=(((1,), (1,)), ((), ())),
                            preferred_element_type=jnp.float32)        # [1, TB]
        o_ref[...] = (y + b2_scalar).astype(o_ref.dtype)

    if nk == 1:
        def kernel(x_ref, w1_ref, b1_ref, w2_ref, b2_ref, o_ref):
            x = x_ref[...]
            if x.dtype != jnp.float32:
                x = x.astype(jnp.float32)
            h = jnp.dot(x, w1_ref[...], preferred_element_type=jnp.float32)
            h = jnp.maximum(h + b1_ref[...], 0.0)                       # [TB, 64]
            _project(h, w2_ref[...], b2_ref[0, 0], o_ref)
        return kernel

    def kernel(x_ref, w1_ref, b1_ref, w2_ref, b2_ref, o_ref, acc_ref):
        k = pl.program_id(1)

        @pl.when(k == 0)
        def _init():
            acc_ref[...] = jnp.zeros_like(acc_ref)

        x = x_ref[...]
        if x.dtype != jnp.float32:
            x = x.astype(jnp.float32)
        if need_k_mask:
            # The last K tile reads past in_dim; zero the invalid columns with a
            # select so OOB garbage (even NaN/Inf) cannot leak into the sum.
            col = lax.broadcasted_iota(jnp.int32, x.shape, 1)
            x = jnp.where(col < in_dim - k * tk, x, 0.0)
        acc_ref[...] += jnp.dot(x, w1_ref[...], preferred_element_type=jnp.float32)

        @pl.when(k == nk - 1)
        def _finalize():
            h = jnp.maximum(acc_ref[...] + b1_ref[...], 0.0)            # [TB, 64]
            _project(h, w2_ref[...], b2_ref[0, 0], o_ref)

    return kernel


def baseline_forward(x, w1, b1, w2, b2, *, block_b=None, block_k=None):
    """x: [batch, *feature_dims] -> [batch]  (== fc2(relu(fc1(x))).squeeze(-1))."""
    # TODO(synk): storch plate-dim bookkeeping (x.plate_dims) has no Pallas
    # equivalent; all leading plate dims are treated as a single batch axis.
    batch = x.shape[0]
    in_dim = math.prod(x.shape[1:]) if x.ndim > 1 else 1
    x2d = x.reshape(batch, in_dim)          # contiguous reshape: no extra copy of x
    x_bytes = x2d.dtype.itemsize

    vmem_limit, tile_budget = _vmem_budget()
    tb, tk = _choose_tiles(batch, in_dim, x_bytes, tile_budget)
    if block_b is not None:
        tb = max(LANE, _round_up(block_b, LANE))
    if block_k is not None:
        tk = in_dim if block_k >= in_dim else max(LANE, _round_up(block_k, LANE))

    nb = _cdiv(batch, tb)
    nk = _cdiv(in_dim, tk)
    k_total = nk * tk
    need_k_mask = k_total != in_dim

    hidden = w1.shape[1]
    # Weights are tiny: pad hidden 50 -> 64 (zero cols: relu(0)=0, w2 pad = 0, so
    # the math is unchanged) and pad W1's K dim to nk*tk rows of zeros.
    w1p = jnp.pad(w1.astype(jnp.float32),
                  ((0, k_total - in_dim), (0, HIDDEN_PAD - hidden)))
    b1p = jnp.pad(b1.reshape(1, hidden).astype(jnp.float32),
                  ((0, 0), (0, HIDDEN_PAD - hidden)))
    w2p = jnp.pad(w2.reshape(hidden, 1).T.astype(jnp.float32),
                  ((0, 0), (0, HIDDEN_PAD - hidden)))
    b2p = b2.reshape(1, 1).astype(jnp.float32)

    resident = dict(pipeline_mode=pl.Buffered(1))   # single-buffer constant blocks
    in_specs = [
        # x streams through in its native dtype; ragged tail tiles read OOB
        # garbage that only ever lands in output lanes that get sliced off.
        pl.BlockSpec((tb, tk), lambda i, k: (i, k)),
        pl.BlockSpec((tk, HIDDEN_PAD), lambda i, k: (k, 0),
                     **(resident if nk == 1 else {})),
        pl.BlockSpec((1, HIDDEN_PAD), lambda i, k: (0, 0), **resident),   # b1
        pl.BlockSpec((1, HIDDEN_PAD), lambda i, k: (0, 0), **resident),   # w2 row
        pl.BlockSpec(memory_space=pltpu.MemorySpace.SMEM),                # b2 scalar
    ]
    scratch = [] if nk == 1 else [pltpu.VMEM((tb, HIDDEN_PAD), jnp.float32)]

    cost = pl.CostEstimate(
        flops=2 * batch * in_dim * HIDDEN_PAD + 2 * batch * HIDDEN_PAD,
        transcendentals=0,
        bytes_accessed=(batch * in_dim * x_bytes
                        + nb * k_total * HIDDEN_PAD * 4
                        + nb * tb * 4),
    )

    out = pl.pallas_call(
        _make_kernel(in_dim, tk, nk, need_k_mask),
        out_shape=jax.ShapeDtypeStruct((1, nb * tb), jnp.float32),
        grid=(nb, nk),
        in_specs=in_specs,
        out_specs=pl.BlockSpec((1, tb), lambda i, k: (0, i)),   # lane-dense slab
        scratch_shapes=scratch,
        compiler_params=pltpu.CompilerParams(
            # batch axis shards across TensorCores (v7x megacore); K is a reduction.
            dimension_semantics=("parallel", "arbitrary"),
            vmem_limit_bytes=int(vmem_limit),
        ),
        cost_estimate=cost,
    )(x2d, w1p, b1p, w2p, b2p)

    return out[0, :batch]        # squeeze(-1) + drop batch-tile padding


def init_params(key, in_dim):
    """Deterministic init mirroring torch.nn.Linear's U(-1/sqrt(fan_in), +)."""
    k1, k2, k3, k4 = jax.random.split(key, 4)
    bound1 = 1.0 / math.sqrt(in_dim)
    bound2 = 1.0 / math.sqrt(HIDDEN)
    w1 = jax.random.uniform(k1, (in_dim, HIDDEN), jnp.float32, -bound1, bound1)
    b1 = jax.random.uniform(k2, (1, HIDDEN), jnp.float32, -bound1, bound1)
    w2 = jax.random.uniform(k3, (HIDDEN, 1), jnp.float32, -bound2, bound2)
    b2 = jax.random.uniform(k4, (1, 1), jnp.float32, -bound2, bound2)
    return w1, b1, w2, b2


def _ref_forward(x, w1, b1, w2, b2):
    x2d = x.reshape(x.shape[0], -1).astype(jnp.float32)
    h = jnp.maximum(x2d @ w1 + b1, 0.0)
    return (h @ w2 + b2)[:, 0]


if __name__ == "__main__":
    key = jax.random.PRNGKey(0)
    kx1, kp1, kx2, kp2 = jax.random.split(key, 4)

    # --- Case 1: reshape=True path (in_dim given as a tuple (4, 8) -> 32) -------
    batch, feat = 8, (4, 8)
    in_dim = math.prod(feat)
    x = jax.random.normal(kx1, (batch,) + feat, dtype=jnp.float32)
    w1, b1, w2, b2 = init_params(kp1, in_dim)
    y = jax.block_until_ready(baseline_forward(x, w1, b1, w2, b2))
    ref = _ref_forward(x, w1, b1, w2, b2)
    assert y.shape == (batch,), y.shape
    err1 = float(jnp.max(jnp.abs(y - ref)))
    assert jnp.allclose(y, ref, atol=2e-2, rtol=2e-2), ("case1 max|err|", err1)

    # --- Case 2: int in_dim path; exercises K-tiling + ragged batch/K tiles -----
    batch2, in_dim2 = 200, 320
    x2 = jax.random.normal(kx2, (batch2, in_dim2), dtype=jnp.float32)
    w1b, b1b, w2b, b2b = init_params(kp2, in_dim2)
    y2 = jax.block_until_ready(
        baseline_forward(x2, w1b, b1b, w2b, b2b, block_b=128, block_k=128))
    ref2 = _ref_forward(x2, w1b, b1b, w2b, b2b)
    assert y2.shape == (batch2,), y2.shape
    err2 = float(jnp.max(jnp.abs(y2 - ref2)))
    assert jnp.allclose(y2, ref2, atol=2e-2, rtol=2e-2), ("case2 max|err|", err2)

    print("KERNEL_OK")
</pallas_src>

<mosaic_0001>
module attributes {stable_mosaic.version = 11 : i64} {
  func.func @kernel(%arg0: i32, %arg1: i32, %arg2: memref<128x32xf32, #tpu.memory_space<vmem>>, %arg3: memref<32x64xf32, #tpu.memory_space<vmem>>, %arg4: memref<1x64xf32, #tpu.memory_space<vmem>>, %arg5: memref<1x64xf32, #tpu.memory_space<vmem>>, %arg6: memref<1x1xf32, #tpu.memory_space<smem>>, %arg7: memref<1x128xf32, #tpu.memory_space<vmem>>) attributes {dimension_semantics = [#tpu.dimension_semantics<parallel>, #tpu.dimension_semantics<arbitrary>], iteration_bounds = array<i64: 1, 1>, scalar_prefetch = 0 : i64, scratch_operands = 0 : i64, tpu.core_type = #tpu.core_type<tc>, window_params = [{transform_indices = @transform_0, window_bounds = array<i64: 128, 32>}, {pipeline_mode = #tpu.pipeline_mode<synchronous>, transform_indices = @transform_1, window_bounds = array<i64: 32, 64>}, {pipeline_mode = #tpu.pipeline_mode<synchronous>, transform_indices = @transform_2, window_bounds = array<i64: 1, 64>}, {pipeline_mode = #tpu.pipeline_mode<synchronous>, transform_indices = @transform_3, window_bounds = array<i64: 1, 64>}, {transform_indices = @transform_4, window_bounds = array<i64: 1, 1>}, {transform_indices = @transform_5, window_bounds = array<i64: 1, 128>}]} {
    %c0 = arith.constant 0 : index
    %c0_0 = arith.constant 0 : index
    %0 = vector.load %arg2[%c0, %c0_0] : memref<128x32xf32, #tpu.memory_space<vmem>>, vector<128x32xf32>
    %c0_1 = arith.constant 0 : index
    %c0_2 = arith.constant 0 : index
    %1 = vector.load %arg3[%c0_1, %c0_2] : memref<32x64xf32, #tpu.memory_space<vmem>>, vector<32x64xf32>
    %cst = arith.constant dense<0.000000e+00> : vector<128x64xf32>
    %2 = tpu.matmul %0, %1, %cst {dimension_numbers = #tpu.dot_dimension_numbers<[1], [0], [0], [1], [0, 0, 1, 1], [], []>} : vector<128x32xf32>, vector<32x64xf32>, vector<128x64xf32> -> vector<128x64xf32>
    %c0_3 = arith.constant 0 : index
    %c0_4 = arith.constant 0 : index
    %3 = vector.load %arg4[%c0_3, %c0_4] : memref<1x64xf32, #tpu.memory_space<vmem>>, vector<1x64xf32>
    %4 = vector.broadcast %3 : vector<1x64xf32> to vector<128x64xf32>
    %5 = arith.addf %2, %4 : vector<128x64xf32>
    %cst_5 = arith.constant 0.000000e+00 : f32
    %6 = vector.broadcast %cst_5 : f32 to vector<128x64xf32>
    %7 = arith.maximumf %5, %6 : vector<128x64xf32>
    %c0_6 = arith.constant 0 : index
    %c0_7 = arith.constant 0 : index
    %8 = vector.load %arg5[%c0_6, %c0_7] : memref<1x64xf32, #tpu.memory_space<vmem>>, vector<1x64xf32>
    %c0_8 = arith.constant 0 : index
    %c0_9 = arith.constant 0 : index
    %9 = memref.load %arg6[%c0_8, %c0_9] : memref<1x1xf32, #tpu.memory_space<smem>>
    %cst_10 = arith.constant dense<0.000000e+00> : vector<1x128xf32>
    %10 = tpu.matmul %8, %7, %cst_10 {dimension_numbers = #tpu.dot_dimension_numbers<[1], [1], [0], [0], [0, 0, 1, 0], [], []>} : vector<1x64xf32>, vector<128x64xf32>, vector<1x128xf32> -> vector<1x128xf32>
    %11 = vector.broadcast %9 : f32 to vector<1x128xf32>
    %12 = arith.addf %10, %11 : vector<1x128xf32>
    %c0_11 = arith.constant 0 : index
    %c0_12 = arith.constant 0 : index
    %13 = vector.load %arg7[%c0_11, %c0_12] : memref<1x128xf32, #tpu.memory_space<vmem>>, vector<1x128xf32>
    tpu.vector_store %arg7[%c0_11, %c0_12], %12 {strides = array<i32>} : memref<1x128xf32, #tpu.memory_space<vmem>>, vector<1x128xf32>,
    return
  }
  func.func @transform_0(%arg0: i32, %arg1: i32) -> (i32, i32) {
    %c0_i32 = arith.constant 0 : i32
    return %arg0, %arg1 : i32, i32
  }
  func.func @transform_1(%arg0: i32, %arg1: i32) -> (i32, i32) {
    %c0_i32 = arith.constant 0 : i32
    %c0_i32_0 = arith.constant 0 : i32
    return %arg1, %c0_i32 : i32, i32
  }
  func.func @transform_2(%arg0: i32, %arg1: i32) -> (i32, i32) {
    %c0_i32 = arith.constant 0 : i32
    %c0_i32_0 = arith.constant 0 : i32
    %c0_i32_1 = arith.constant 0 : i32
    return %c0_i32, %c0_i32_0 : i32, i32
  }
  func.func @transform_3(%arg0: i32, %arg1: i32) -> (i32, i32) {
    %c0_i32 = arith.constant 0 : i32
    %c0_i32_0 = arith.constant 0 : i32
    %c0_i32_1 = arith.constant 0 : i32
    return %c0_i32, %c0_i32_0 : i32, i32
  }
  func.func @transform_4(%arg0: i32, %arg1: i32) -> (i32, i32) {
    %c0_i32 = arith.constant 0 : i32
    %c0_i32_0 = arith.constant 0 : i32
    %c0_i32_1 = arith.constant 0 : i32
    return %c0_i32, %c0_i32_0 : i32, i32
  }
  func.func @transform_5(%arg0: i32, %arg1: i32) -> (i32, i32) {
    %c0_i32 = arith.constant 0 : i32
    %c0_i32_0 = arith.constant 0 : i32
    return %c0_i32, %arg0 : i32, i32
  }
}

</mosaic_0001>

<bundles_post_ra>
// kernel: tpu_custom_call.1
= control target key start
LH: loop header
LB: loop body
LE: loop exit
PB: predicated region body
PF: predicated region fallthrough
CT: control target
= control target key end

     0   :  { %11 = vsyncpa [#allocation4], 0  ;;  %s754_s0 = inlined_call_operand.hbm [shape: f32[8,32], index: 0, kind: input, shape index: {}]   ;;  %s755_s1 = inlined_call_operand.hbm [shape: f32[32,64], index: 1, kind: input, shape index: {}]   ;;  %s756_s2 = inlined_call_operand.vmem [shape: f32[1,64], index: 2, kind: input, shape index: {}]   ;;  %s757_s3 = inlined_call_operand.vmem [shape: f32[1,64], index: 3, kind: input, shape index: {}]   ;;  %s758_s4 = inlined_call_operand.<no memory space> [shape: f32[1,1], index: 4, kind: input, shape index: {}]   ;;  %s759_s5 = inlined_call_operand.hbm [shape: f32[1,128], index: 5, kind: output, shape index: {}]  }
   0x1   :  { %12 = vsyncpa [#allocation7], 0 }
   0x2   :  { %13 = vsyncpa [#allocation5], 0 }
   0x3   :  { %18 = vsyncadd [#allocation4], 1920  ;;  %s640_s18 = smov [#allocation3]  }
   0x4   :  { %s19_s19 = sshll.u32 %s640_s18, 4  ;;  %s20_s19 = int_to_ptr.vmem [resolvable:$true] %s19_s19 }
   0x5   :  { %s582_s20 = scalar_lea.vmem %s20_s19, 128  ;;  %s586_s21 = scalar_lea.vmem %s20_s19, 2048 }
   0x6   :  { %p583_p0 = scmp.ne.s32.totalorder %s20_s19, %s582_s20  ;;  %p587_p1 = scmp.lt.s32.totalorder %s20_s19, %s20_s19 }
   0x7   :  { %p588_p2 = scmp.lt.s32.totalorder %s586_s21, %s582_s20 }
   0x9   :  { %p589_p3 = por %p588_p2, %p587_p1 }
   0xb   :  { %p590_p4 = pnand %p589_p3, %p583_p0 }
   0xd   :  { %593 = shalt.err (!%p590_p4)
}
   0xe   :  { %s641_s22 = smov 128   ;;  %s642_s23 = smov 8  }
   0xf   :  { %25 = dma.hbm_to_vmem [thread:$0]  %s754_s0, 128, %s20_s19, [#allocation4], %s641_s22, %s641_s22, %s642_s23  }
  0x10   :  { %s643_s26 = smov [#allocation6]  }
  0x11   :  { %s31_s27 = sshll.u32 %s643_s26, 4  ;;  %s32_s27 = int_to_ptr.vmem [resolvable:$true] %s31_s27 }
  0x12   :  { %s602_s28 = scalar_lea.vmem %s32_s27, 512  ;;  %p607_p6 = scmp.lt.s32.totalorder %s32_s27, %s32_s27 }
  0x13   :  { %p603_p5 = scmp.ne.s32.totalorder %s32_s27, %s602_s28  ;;  %p608_p7 = scmp.lt.s32.totalorder %s602_s28, %s602_s28 }
  0x15   :  { %p609_p8 = por %p608_p7, %p607_p6 }
  0x17   :  { %p610_p9 = pnand %p609_p8, %p603_p5 }
  0x19   :  { %613 = shalt.err (!%p610_p9)
}
  0x1a   :  { %37 = dma.hbm_to_vmem [thread:$0]  %s755_s1, 512, %s32_s27, [#allocation7], %s641_s22, %s641_s22, %s642_s23  }
  0x1b   :  { %634 = dma.done.wait [#allocation4], 2048  }
  0x1c   :  { %635 = vsyncadd [#allocation4], 4294965248 }
  0x1d   :  { %636 = dma.done.wait [#allocation7], 512  }
  0x1e   :  { %637 = vsyncadd [#allocation7], 4294966784  ;;  %vm77_vm0 = vcmask 261120   ;;  %v69_v0 = vld [vmem:[#allocation6 + $0x18] sm:$0xff]  ;;  %v68_v1 = vld [vmem:[#allocation6 + $0x10] sm:$0xff]  ;;  %v644_v20 = vmov 0.0  }
  0x1f   :  { %500 = vmatprep.subr.mxu0 %v69_v0  ;;  %v50_v2 = vld [vmem:[#allocation3] sm:$0xff]  ;;  %v67_v3 = vld [vmem:[#allocation6 + $0x8] sm:$0xff]  ;;  %v52_v6 = vld [vmem:[#allocation3 + $0x10] sm:$0xff]  ;;  %532 = vmatprep.subr.mxu1 %v644_v20  ;;  %vm645_vm1 = vmmov 0   ;;  %vm290_vm2 = vcmask 523264   ;;  %s646_s9 = smov [#allocation8]  }
  0x20   :  { %501 = vmatpush3.msra.mxu0 %v69_v0  ;;  %508 = vmatprep.mubr.msk.f32.mxu0 %vm77_vm0, %v50_v2  ;;  %v66_v4 = vld [vmem:[#allocation6] sm:$0xff]  ;;  %v51_v5 = vld [vmem:[#allocation3 + $0x8] sm:$0xff]  ;;  %v53_v7 = vld [vmem:[#allocation3 + $0x18] sm:$0xff]  ;;  %s419_s10 = sshll.u32 %s646_s9, 4  ;;  %s420_s10 = int_to_ptr.vmem [resolvable:$true] %s419_s10 }
  0x21   :  { %502 = vmatprep.subr.mxu0 %v68_v1  ;;  %v54_v8 = vld [vmem:[#allocation3 + $0x20] sm:$0xff]  ;;  %v55_v9 = vld [vmem:[#allocation3 + $0x28] sm:$0xff]  ;;  %v56_v10 = vld [vmem:[#allocation3 + $0x30] sm:$0xff]  ;;  %564 = vmatprep.mubr.msk.f32.mxu1 %vm645_vm1, %v644_v20  ;;  %s614_s11 = scalar_lea.vmem %s420_s10, 16  ;;  %s618_s12 = scalar_lea.vmem %s420_s10, 32 }
  0x22   :  { %503 = vmatpush3.msra.mxu0 %v68_v1  ;;  %v57_v11 = vld [vmem:[#allocation3 + $0x38] sm:$0xff]  ;;  %v58_v12 = vld [vmem:[#allocation3 + $0x40] sm:$0xff]  ;;  %v59_v13 = vld [vmem:[#allocation3 + $0x48] sm:$0xff]  ;;  %p615_p10 = scmp.ne.s32.totalorder %s420_s10, %s614_s11  ;;  %p619_p11 = scmp.lt.s32.totalorder %s420_s10, %s420_s10 }
  0x23   :  { %504 = vmatprep.subr.mxu0 %v67_v3  ;;  %v60_v14 = vld [vmem:[#allocation3 + $0x50] sm:$0xff]  ;;  %v61_v15 = vld [vmem:[#allocation3 + $0x58] sm:$0xff]  ;;  %v62_v16 = vld [vmem:[#allocation3 + $0x60] sm:$0xff]  ;;  %p620_p12 = scmp.lt.s32.totalorder %s618_s12, %s614_s11 }
  0x24   :  { %505 = vmatpush3.msra.mxu0 %v67_v3  ;;  %v63_v17 = vld [vmem:[#allocation3 + $0x68] sm:$0xff]  ;;  %v64_v18 = vld [vmem:[#allocation3 + $0x70] sm:$0xff]  ;;  %v65_v19 = vld [vmem:[#allocation3 + $0x78] sm:$0xff] }
  0x25   :  { %506 = vmatprep.subr.mxu0 %v66_v4  ;;  %v429_v35 = vld [vmem:[%s756_s2] ss:$0 sm:$0xff]  ;;  %p621_p13 = por %p620_p12, %p619_p11 }
  0x26   :  { %507 = vmatpush3.msra.mxu0 %v66_v4 }
  0x27   :  { %509 = vmatmul.mubr.msk.f32.vlgmr.msra.gmra.mxu0 %vm77_vm0, %v51_v5  ;;  %p622_p0 = pnand %p621_p13, %p615_p10 }
  0x28   :  { %511 = vmatprep.mubr.msk.f32.mxu0 %vm77_vm0, %v52_v6  ;;  %v287_v6 = vld [vmem:[%s757_s3] sm:$0x1] }
  0x2b   :  { %512 = vmatmul.mubr.msk.f32.gmra.mxu0 %vm77_vm0, %v53_v7  ;;  %v289_v7 = vstv %s758_s4 }
  0x2c   :  { %514 = vmatprep.mubr.msk.f32.mxu0 %vm77_vm0, %v54_v8 }
  0x2f   :  { %515 = vmatmul.mubr.msk.f32.gmra.mxu0 %vm77_vm0, %v55_v9 }
  0x30   :  { %517 = vmatprep.mubr.msk.f32.mxu0 %vm77_vm0, %v56_v10 }
  0x33   :  { %518 = vmatmul.mubr.msk.f32.gmra.mxu0 %vm77_vm0, %v57_v11 }
  0x34   :  { %520 = vmatprep.mubr.msk.f32.mxu0 %vm77_vm0, %v58_v12 }
  0x37   :  { %521 = vmatmul.mubr.msk.f32.gmra.mxu0 %vm77_vm0, %v59_v13 }
  0x38   :  { %523 = vmatprep.mubr.msk.f32.mxu0 %vm77_vm0, %v60_v14 }
  0x3b   :  { %524 = vmatmul.mubr.msk.f32.gmra.mxu0 %vm77_vm0, %v61_v15 }
  0x3c   :  { %526 = vmatprep.mubr.msk.f32.mxu0 %vm77_vm0, %v62_v16 }
  0x3f   :  { %527 = vmatmul.mubr.msk.f32.gmra.mxu0 %vm77_vm0, %v63_v17 }
  0x40   :  { %529 = vmatprep.mubr.msk.f32.mxu0 %vm77_vm0, %v64_v18 }
  0x43   :  { %530 = vmatmul.mubr.msk.f32.gmra.mxu0 %vm77_vm0, %v65_v19 }
  0xe7   :  { %v701_v21 = vpop.f32.mrf.mxu0 }
  0xe8   :  { %v198_v1 = vadd.f32 %v701_v21, %v429_v35 }
  0xe9   :  { %v703_v22 = vpop.f32.mrf.mxu0 }
  0xea   :  { %v272_v3 = vmax.f32 %v198_v1, 0.0  ;;  %v193_v4 = vadd.f32 %v429_v35, %v703_v22 }
  0xeb   :  { %v513_v23 = vpop.f32.mrf.mxu0 }
  0xec   :  { %v208_v61 = vadd.f32 %v513_v23, %v429_v35  ;;  %v271_v5 = vmax.f32 %v193_v4, 0.0 }
  0xed   :  { %v705_v24 = vpop.f32.mrf.mxu0 }
  0xee   :  { %v274_v63 = vmax.f32 %v208_v61, 0.0  ;;  %v203_v0 = vadd.f32 %v429_v35, %v705_v24 }
  0xef   :  { %v516_v25 = vpop.f32.mrf.mxu0 }
  0xf0   :  { %v218_v57 = vadd.f32 %v516_v25, %v429_v35  ;;  %v273_v2 = vmax.f32 %v203_v0, 0.0 }
  0xf1   :  { %v212_v26 = vpop.f32.mrf.mxu0 }
  0xf2   :  { %v276_v59 = vmax.f32 %v218_v57, 0.0  ;;  %v213_v60 = vadd.f32 %v429_v35, %v212_v26 }
  0xf3   :  { %v519_v27 = vpop.f32.mrf.mxu0 }
  0xf4   :  { %v228_v53 = vadd.f32 %v519_v27, %v429_v35  ;;  %v275_v62 = vmax.f32 %v213_v60, 0.0 }
  0xf5   :  { %v222_v28 = vpop.f32.mrf.mxu0 }
  0xf6   :  { %v278_v55 = vmax.f32 %v228_v53, 0.0  ;;  %v223_v56 = vadd.f32 %v429_v35, %v222_v28 }
  0xf7   :  { %v522_v29 = vpop.f32.mrf.mxu0 }
  0xf8   :  { %v238_v49 = vadd.f32 %v522_v29, %v429_v35  ;;  %v277_v58 = vmax.f32 %v223_v56, 0.0 }
  0xf9   :  { %v232_v30 = vpop.f32.mrf.mxu0 }
  0xfa   :  { %v280_v51 = vmax.f32 %v238_v49, 0.0  ;;  %v233_v52 = vadd.f32 %v429_v35, %v232_v30 }
  0xfb   :  { %v525_v31 = vpop.f32.mrf.mxu0 }
  0xfc   :  { %v248_v45 = vadd.f32 %v525_v31, %v429_v35  ;;  %v279_v54 = vmax.f32 %v233_v52, 0.0 }
  0xfd   :  { %v242_v32 = vpop.f32.mrf.mxu0 }
  0xfe   :  { %v282_v47 = vmax.f32 %v248_v45, 0.0  ;;  %v243_v48 = vadd.f32 %v429_v35, %v242_v32 }
  0xff   :  { %v528_v33 = vpop.f32.mrf.mxu0 }
 0x100   :  { %v258_v41 = vadd.f32 %v528_v33, %v429_v35  ;;  %v281_v50 = vmax.f32 %v243_v48, 0.0 }
 0x101   :  { %v252_v34 = vpop.f32.mrf.mxu0 }
 0x102   :  { %v284_v43 = vmax.f32 %v258_v41, 0.0  ;;  %v253_v44 = vadd.f32 %v429_v35, %v252_v34 }
 0x103   :  { %v531_v36 = vpop.f32.mrf.mxu0 }
 0x104   :  { %v268_v37 = vadd.f32 %v531_v36, %v429_v35  ;;  %v283_v46 = vmax.f32 %v253_v44, 0.0 }
 0x105   :  { %v262_v38 = vpop.f32.mrf.mxu0 }
 0x106   :  { %v286_v39 = vmax.f32 %v268_v37, 0.0  ;;  %v263_v40 = vadd.f32 %v429_v35, %v262_v38 }
 0x108   :  { %533 = vmatpush3.xpose.msk.msra.mxu1 %vm290_vm2, %v286_v39  ;;  %v285_v42 = vmax.f32 %v263_v40, 0.0 }
 0x109   :  { %534 = vmatprep.subr.mxu1 %v644_v20 }
 0x10c   :  { %535 = vmatpush3.xpose.msk.msra.mxu1 %vm290_vm2, %v285_v42 }
 0x10d   :  { %536 = vmatprep.subr.mxu1 %v644_v20 }
 0x110   :  { %537 = vmatpush3.xpose.msk.msra.mxu1 %vm290_vm2, %v284_v43 }
 0x111   :  { %538 = vmatprep.subr.mxu1 %v644_v20 }
 0x114   :  { %539 = vmatpush3.xpose.msk.msra.mxu1 %vm290_vm2, %v283_v46 }
 0x115   :  { %540 = vmatprep.subr.mxu1 %v644_v20 }
 0x118   :  { %541 = vmatpush3.xpose.msk.msra.mxu1 %vm290_vm2, %v282_v47 }
 0x119   :  { %542 = vmatprep.subr.mxu1 %v644_v20 }
 0x11c   :  { %543 = vmatpush3.xpose.msk.msra.mxu1 %vm290_vm2, %v281_v50 }
 0x11d   :  { %544 = vmatprep.subr.mxu1 %v644_v20 }
 0x120   :  { %545 = vmatpush3.xpose.msk.msra.mxu1 %vm290_vm2, %v280_v51 }
 0x121   :  { %546 = vmatprep.subr.mxu1 %v644_v20 }
 0x124   :  { %547 = vmatpush3.xpose.msk.msra.mxu1 %vm290_vm2, %v279_v54 }
 0x125   :  { %548 = vmatprep.subr.mxu1 %v644_v20 }
 0x128   :  { %549 = vmatpush3.xpose.msk.msra.mxu1 %vm290_vm2, %v278_v55 }
 0x129   :  { %550 = vmatprep.subr.mxu1 %v644_v20 }
 0x12c   :  { %551 = vmatpush3.xpose.msk.msra.mxu1 %vm290_vm2, %v277_v58 }
 0x12d   :  { %552 = vmatprep.subr.mxu1 %v644_v20 }
 0x130   :  { %553 = vmatpush3.xpose.msk.msra.mxu1 %vm290_vm2, %v276_v59 }
 0x131   :  { %554 = vmatprep.subr.mxu1 %v644_v20 }
 0x134   :  { %555 = vmatpush3.xpose.msk.msra.mxu1 %vm290_vm2, %v275_v62 }
 0x135   :  { %556 = vmatprep.subr.mxu1 %v644_v20 }
 0x138   :  { %557 = vmatpush3.xpose.msk.msra.mxu1 %vm290_vm2, %v274_v63 }
 0x139   :  { %558 = vmatprep.subr.mxu1 %v644_v20 }
 0x13c   :  { %559 = vmatpush3.xpose.msk.msra.mxu1 %vm290_vm2, %v273_v2 }
 0x13d   :  { %560 = vmatprep.subr.mxu1 %v644_v20 }
 0x140   :  { %561 = vmatpush3.xpose.msk.msra.mxu1 %vm290_vm2, %v272_v3 }
 0x141   :  { %562 = vmatprep.subr.mxu1 %v644_v20 }
 0x144   :  { %563 = vmatpush3.xpose.msk.msra.mxu1 %vm290_vm2, %v271_v5 }
 0x147   :  { %565 = vmatmul.mubr.msk.f32.vlgmr.msra.gmra.mxu1 %vm290_vm2, %v287_v6 }
 0x207   :  { %v408_v8 = vpop.f32.mrf.mxu1 }
 0x208   :  { %v409_v9 = vadd.f32 %v408_v8, %v289_v7 }
 0x209   :  { %v566_v10 = vpop.f32.mrf.mxu1 }
 0x20a   :  { %412 = vst [vmem:[#allocation8] sm:$0x1] %v409_v9 }
 0x20b   :  { %625 = shalt.err (!%p622_p0)
}
 0x20c   :  { %422 = dma.vmem_to_hbm [thread:$0]  %s420_s10, 16, %s759_s5, [#allocation5]  }
 0x20d   :  { %638 = dma.done.wait [#allocation5], 16  }
 0x20e   :  { %639 = vsyncadd [#allocation5], 4294967280 }
 0x20f   :  { %426 = vsyncpa [#allocation4], 1 }
 0x210   :  { %427 = vsyncpa [#allocation7], 1 }
 0x211   :  { %428 = vsyncpa [#allocation5], 1 }

</bundles_post_ra>
